<compile_context>
chip_gen: v6e
topology: v6e:2x2x1
jax: 0.10.0
libtpu: 0.0.40
codegen_flags: <defaults>
</compile_context>

<pallas_src>
import functools

import jax
import jax.numpy as jnp
from jax import lax
from jax.experimental import pallas as pl
from jax.experimental.pallas import tpu as pltpu


def _round_up(n, m):
    return ((n + m - 1) // m) * m


def _dagmm_kernel(x_ref, mask_ref,
                  w1, b1, w2, b2, w3, b3, w4, b4,
                  w5, b5, w6, b6, w7, b7, w8, b8,
                  w9, b9, w10, b10,
                  out_ref, *, input_size, z_dim, n_gmm):
    x = x_ref[...].astype(jnp.float32)

    def lin(h, w, b):
        return jnp.dot(h, w[...], preferred_element_type=jnp.float32) + b[...]

    # ---- encoder: fc1..fc4 ----
    h = jnp.tanh(lin(x, w1, b1))
    h = jnp.tanh(lin(h, w2, b2))
    h = jnp.tanh(lin(h, w3, b3))
    z_c = lin(h, w4, b4)                                   # (tb, z_dim)

    # ---- decoder: fc5..fc8 ----
    h = jnp.tanh(lin(z_c, w5, b5))
    h = jnp.tanh(lin(h, w6, b6))
    h = jnp.tanh(lin(h, w7, b7))
    x_hat = lin(h, w8, b8)                                 # (tb, input_size)

    # ---- reconstruction features (one reduction pass, rsqrt not divide) ----
    diff = x - x_hat
    x_sq = jnp.sum(x * x, axis=1, keepdims=True)
    xh_sq = jnp.sum(x_hat * x_hat, axis=1, keepdims=True)
    d_sq = jnp.sum(diff * diff, axis=1, keepdims=True)
    dot_xxh = jnp.sum(x * x_hat, axis=1, keepdims=True)

    rec1 = jnp.sqrt(d_sq) * lax.rsqrt(x_sq)                # ||x - x_hat|| / ||x||
    eps = jnp.float32(1e-8)                                # F.cosine_similarity eps
    rec2 = dot_xxh / (jnp.maximum(jnp.sqrt(x_sq), eps) *
                      jnp.maximum(jnp.sqrt(xh_sq), eps))   # cosine similarity

    # ---- estimation net: fc9 on z = [z_c | rec1 | rec2] without a concat ----
    h9 = (jnp.dot(z_c, w9[0:z_dim, :], preferred_element_type=jnp.float32)
          + rec1 * w9[z_dim:z_dim + 1, :]
          + rec2 * w9[z_dim + 1:z_dim + 2, :]
          + b9[...])
    h = jnp.tanh(h9)
    # F.dropout(p=0.5, training=True): mask_ref already holds keep_mask * 2.0.
    h = h * mask_ref[...]
    logits = lin(h, w10, b10)                              # (tb, n_gmm)
    m = jnp.max(logits, axis=1, keepdims=True)
    e = jnp.exp(logits - m)
    gamma = e / jnp.sum(e, axis=1, keepdims=True)

    # ---- single lane-dense packed output: [x_hat | z_c | rec1 | rec2 | gamma | 0] ----
    o1 = input_size
    o2 = o1 + z_dim
    o3 = o2 + 1
    o4 = o3 + 1
    o5 = o4 + n_gmm
    out_ref[:, 0:o1] = x_hat.astype(out_ref.dtype)
    out_ref[:, o1:o2] = z_c.astype(out_ref.dtype)
    out_ref[:, o2:o3] = rec1.astype(out_ref.dtype)
    out_ref[:, o3:o4] = rec2.astype(out_ref.dtype)
    out_ref[:, o4:o5] = gamma.astype(out_ref.dtype)
    pad = out_ref.shape[1] - o5
    if pad > 0:
        out_ref[:, o5:] = jnp.zeros((x.shape[0], pad), out_ref.dtype)


def dagmm_forward(x, params, *, dropout_key=None, seed=0, tile_b=512):
    """Returns (z_c, x_hat, z, gamma) like DAGMMModule.forward."""
    B, input_size = x.shape
    z_dim = params["w4"].shape[1]
    n_gmm = params["w10"].shape[1]
    est_hidden = params["w9"].shape[1]                     # 10

    if dropout_key is None:
        dropout_key = jax.random.PRNGKey(seed)

    # Batch tiling: pad rows up to a multiple of the tile size (>= 8 sublanes).
    tb = min(tile_b, _round_up(B, 8))
    Bp = _round_up(B, tb)

    xp = x.astype(jnp.float32)
    if Bp != B:
        xp = jnp.pad(xp, ((0, Bp - B), (0, 0)))            # padded rows discarded later

    # Dropout keep-mask, pre-scaled by 1/(1-p) = 2.0 (F.dropout default training=True).
    # TODO(synk): mask comes from JAX's threefry PRNG, not PyTorch's RNG stream.
    keep = jax.random.bernoulli(dropout_key, 0.5, (Bp, est_hidden))
    mask = keep.astype(jnp.float32) * jnp.float32(2.0)

    weight_args, weight_specs = [], []
    for li in range(1, 11):
        w = params[f"w{li}"].astype(jnp.float32)
        b = params[f"b{li}"].astype(jnp.float32).reshape(1, -1)
        weight_args += [w, b]
        # Constant block index -> fetched once, stays VMEM-resident across tiles.
        weight_specs += [pl.BlockSpec(w.shape, lambda i: (0, 0)),
                         pl.BlockSpec(b.shape, lambda i: (0, 0))]

    pack_w = _round_up(input_size + z_dim + 2 + n_gmm, 128)
    grid = (Bp // tb,)

    kernel = functools.partial(_dagmm_kernel, input_size=input_size,
                               z_dim=z_dim, n_gmm=n_gmm)

    packed = pl.pallas_call(
        kernel,
        out_shape=jax.ShapeDtypeStruct((Bp, pack_w), jnp.float32),
        grid=grid,
        in_specs=[pl.BlockSpec((tb, input_size), lambda i: (i, 0)),
                  pl.BlockSpec((tb, est_hidden), lambda i: (i, 0))] + weight_specs,
        out_specs=pl.BlockSpec((tb, pack_w), lambda i: (i, 0)),
        compiler_params=pltpu.CompilerParams(
            dimension_semantics=("parallel",)),
    )(xp, mask, *weight_args)

    packed = packed[:B]
    x_hat = packed[:, :input_size]
    z = packed[:, input_size:input_size + z_dim + 2]
    z_c = z[:, :z_dim]
    gamma = packed[:, input_size + z_dim + 2: input_size + z_dim + 2 + n_gmm]
    return z_c, x_hat, z, gamma


def init_params(key, input_size, n_gmm=2, z_dim=1):
    """Deterministic nn.Linear-style init: U(-1/sqrt(fan_in), 1/sqrt(fan_in))."""
    dims = [(input_size, 60), (60, 30), (30, 10), (10, z_dim),     # encoder
            (z_dim, 10), (10, 30), (30, 60), (60, input_size),     # decoder
            (z_dim + 2, 10), (10, n_gmm)]                          # estimation net
    keys = jax.random.split(key, 2 * len(dims))
    params = {}
    for i, (din, dout) in enumerate(dims):
        bound = 1.0 / (din ** 0.5)
        params[f"w{i+1}"] = jax.random.uniform(
            keys[2 * i], (din, dout), jnp.float32, -bound, bound)
        params[f"b{i+1}"] = jax.random.uniform(
            keys[2 * i + 1], (dout,), jnp.float32, -bound, bound)
    return params


if __name__ == "__main__":
    B, input_size, n_gmm, z_dim = 8, 32, 2, 1

    root = jax.random.PRNGKey(0)
    pkey, xkey, dkey = jax.random.split(root, 3)
    params = init_params(pkey, input_size, n_gmm=n_gmm, z_dim=z_dim)
    x = jax.random.normal(xkey, (B, input_size), jnp.float32)

    z_c, x_hat, z, gamma = dagmm_forward(x, params, dropout_key=dkey)
    jax.block_until_ready((z_c, x_hat, z, gamma))

    assert z_c.shape == (B, z_dim)
    assert x_hat.shape == (B, input_size)
    assert z.shape == (B, z_dim + 2)
    assert gamma.shape == (B, n_gmm)
    # softmax rows must sum to 1
    assert bool(jnp.allclose(jnp.sum(gamma, axis=1), 1.0, atol=1e-5))
    # z_c must be the leading columns of z
    assert bool(jnp.allclose(z[:, :z_dim], z_c))

    print("KERNEL_OK")
</pallas_src>

<mosaic_0001>
module attributes {stable_mosaic.version = 11 : i64} {
  func.func @_dagmm_kernel(%arg0: i32, %arg1: memref<8x32xf32, #tpu.memory_space<vmem>>, %arg2: memref<8x10xf32, #tpu.memory_space<vmem>>, %arg3: memref<32x60xf32, #tpu.memory_space<vmem>>, %arg4: memref<1x60xf32, #tpu.memory_space<vmem>>, %arg5: memref<60x30xf32, #tpu.memory_space<vmem>>, %arg6: memref<1x30xf32, #tpu.memory_space<vmem>>, %arg7: memref<30x10xf32, #tpu.memory_space<vmem>>, %arg8: memref<1x10xf32, #tpu.memory_space<vmem>>, %arg9: memref<10x1xf32, #tpu.memory_space<vmem>>, %arg10: memref<1x1xf32, #tpu.memory_space<vmem>>, %arg11: memref<1x10xf32, #tpu.memory_space<vmem>>, %arg12: memref<1x10xf32, #tpu.memory_space<vmem>>, %arg13: memref<10x30xf32, #tpu.memory_space<vmem>>, %arg14: memref<1x30xf32, #tpu.memory_space<vmem>>, %arg15: memref<30x60xf32, #tpu.memory_space<vmem>>, %arg16: memref<1x60xf32, #tpu.memory_space<vmem>>, %arg17: memref<60x32xf32, #tpu.memory_space<vmem>>, %arg18: memref<1x32xf32, #tpu.memory_space<vmem>>, %arg19: memref<3x10xf32, #tpu.memory_space<vmem>>, %arg20: memref<1x10xf32, #tpu.memory_space<vmem>>, %arg21: memref<10x2xf32, #tpu.memory_space<vmem>>, %arg22: memref<1x2xf32, #tpu.memory_space<vmem>>, %arg23: memref<8x128xf32, #tpu.memory_space<vmem>>) attributes {dimension_semantics = [#tpu.dimension_semantics<parallel>], iteration_bounds = array<i64: 1>, scalar_prefetch = 0 : i64, scratch_operands = 0 : i64, tpu.core_type = #tpu.core_type<tc>, window_params = [{transform_indices = @transform_0, window_bounds = array<i64: 8, 32>}, {transform_indices = @transform_1, window_bounds = array<i64: 8, 10>}, {pipeline_mode = #tpu.pipeline_mode<synchronous>, transform_indices = @transform_2, window_bounds = array<i64: 32, 60>}, {pipeline_mode = #tpu.pipeline_mode<synchronous>, transform_indices = @transform_3, window_bounds = array<i64: 1, 60>}, {pipeline_mode = #tpu.pipeline_mode<synchronous>, transform_indices = @transform_4, window_bounds = array<i64: 60, 30>}, {pipeline_mode = #tpu.pipeline_mode<synchronous>, transform_indices = @transform_5, window_bounds = array<i64: 1, 30>}, {pipeline_mode = #tpu.pipeline_mode<synchronous>, transform_indices = @transform_6, window_bounds = array<i64: 30, 10>}, {pipeline_mode = #tpu.pipeline_mode<synchronous>, transform_indices = @transform_7, window_bounds = array<i64: 1, 10>}, {pipeline_mode = #tpu.pipeline_mode<synchronous>, transform_indices = @transform_8, window_bounds = array<i64: 10, 1>}, {pipeline_mode = #tpu.pipeline_mode<synchronous>, transform_indices = @transform_9, window_bounds = array<i64: 1, 1>}, {pipeline_mode = #tpu.pipeline_mode<synchronous>, transform_indices = @transform_10, window_bounds = array<i64: 1, 10>}, {pipeline_mode = #tpu.pipeline_mode<synchronous>, transform_indices = @transform_11, window_bounds = array<i64: 1, 10>}, {pipeline_mode = #tpu.pipeline_mode<synchronous>, transform_indices = @transform_12, window_bounds = array<i64: 10, 30>}, {pipeline_mode = #tpu.pipeline_mode<synchronous>, transform_indices = @transform_13, window_bounds = array<i64: 1, 30>}, {pipeline_mode = #tpu.pipeline_mode<synchronous>, transform_indices = @transform_14, window_bounds = array<i64: 30, 60>}, {pipeline_mode = #tpu.pipeline_mode<synchronous>, transform_indices = @transform_15, window_bounds = array<i64: 1, 60>}, {pipeline_mode = #tpu.pipeline_mode<synchronous>, transform_indices = @transform_16, window_bounds = array<i64: 60, 32>}, {pipeline_mode = #tpu.pipeline_mode<synchronous>, transform_indices = @transform_17, window_bounds = array<i64: 1, 32>}, {pipeline_mode = #tpu.pipeline_mode<synchronous>, transform_indices = @transform_18, window_bounds = array<i64: 3, 10>}, {pipeline_mode = #tpu.pipeline_mode<synchronous>, transform_indices = @transform_19, window_bounds = array<i64: 1, 10>}, {pipeline_mode = #tpu.pipeline_mode<synchronous>, transform_indices = @transform_20, window_bounds = array<i64: 10, 2>}, {pipeline_mode = #tpu.pipeline_mode<synchronous>, transform_indices = @transform_21, window_bounds = array<i64: 1, 2>}, {transform_indices = @transform_22, window_bounds = array<i64: 8, 128>}]} {
    %c0 = arith.constant 0 : index
    %c0_0 = arith.constant 0 : index
    %0 = vector.load %arg1[%c0, %c0_0] : memref<8x32xf32, #tpu.memory_space<vmem>>, vector<8x32xf32>
    %c0_1 = arith.constant 0 : index
    %c0_2 = arith.constant 0 : index
    %1 = vector.load %arg3[%c0_1, %c0_2] : memref<32x60xf32, #tpu.memory_space<vmem>>, vector<32x60xf32>
    %cst = arith.constant dense<0.000000e+00> : vector<8x60xf32>
    %2 = tpu.matmul %0, %1, %cst {dimension_numbers = #tpu.dot_dimension_numbers<[1], [0], [0], [1], [0, 0, 1, 1], [], []>} : vector<8x32xf32>, vector<32x60xf32>, vector<8x60xf32> -> vector<8x60xf32>
    %c0_3 = arith.constant 0 : index
    %c0_4 = arith.constant 0 : index
    %3 = vector.load %arg4[%c0_3, %c0_4] : memref<1x60xf32, #tpu.memory_space<vmem>>, vector<1x60xf32>
    %4 = vector.broadcast %3 : vector<1x60xf32> to vector<8x60xf32>
    %5 = arith.addf %2, %4 : vector<8x60xf32>
    %6 = math.tanh %5 : vector<8x60xf32>
    %c0_5 = arith.constant 0 : index
    %c0_6 = arith.constant 0 : index
    %7 = vector.load %arg5[%c0_5, %c0_6] : memref<60x30xf32, #tpu.memory_space<vmem>>, vector<60x30xf32>
    %cst_7 = arith.constant dense<0.000000e+00> : vector<8x30xf32>
    %8 = tpu.matmul %6, %7, %cst_7 {dimension_numbers = #tpu.dot_dimension_numbers<[1], [0], [0], [1], [0, 0, 1, 1], [], []>} : vector<8x60xf32>, vector<60x30xf32>, vector<8x30xf32> -> vector<8x30xf32>
    %c0_8 = arith.constant 0 : index
    %c0_9 = arith.constant 0 : index
    %9 = vector.load %arg6[%c0_8, %c0_9] : memref<1x30xf32, #tpu.memory_space<vmem>>, vector<1x30xf32>
    %10 = vector.broadcast %9 : vector<1x30xf32> to vector<8x30xf32>
    %11 = arith.addf %8, %10 : vector<8x30xf32>
    %12 = math.tanh %11 : vector<8x30xf32>
    %c0_10 = arith.constant 0 : index
    %c0_11 = arith.constant 0 : index
    %13 = vector.load %arg7[%c0_10, %c0_11] : memref<30x10xf32, #tpu.memory_space<vmem>>, vector<30x10xf32>
    %cst_12 = arith.constant dense<0.000000e+00> : vector<8x10xf32>
    %14 = tpu.matmul %12, %13, %cst_12 {dimension_numbers = #tpu.dot_dimension_numbers<[1], [0], [0], [1], [0, 0, 1, 1], [], []>} : vector<8x30xf32>, vector<30x10xf32>, vector<8x10xf32> -> vector<8x10xf32>
    %c0_13 = arith.constant 0 : index
    %c0_14 = arith.constant 0 : index
    %15 = vector.load %arg8[%c0_13, %c0_14] : memref<1x10xf32, #tpu.memory_space<vmem>>, vector<1x10xf32>
    %16 = vector.broadcast %15 : vector<1x10xf32> to vector<8x10xf32>
    %17 = arith.addf %14, %16 : vector<8x10xf32>
    %18 = math.tanh %17 : vector<8x10xf32>
    %c0_15 = arith.constant 0 : index
    %c0_16 = arith.constant 0 : index
    %19 = vector.load %arg9[%c0_15, %c0_16] : memref<10x1xf32, #tpu.memory_space<vmem>>, vector<10x1xf32>
    %cst_17 = arith.constant dense<0.000000e+00> : vector<8x1xf32>
    %20 = tpu.matmul %18, %19, %cst_17 {dimension_numbers = #tpu.dot_dimension_numbers<[1], [0], [0], [1], [0, 0, 1, 1], [], []>} : vector<8x10xf32>, vector<10x1xf32>, vector<8x1xf32> -> vector<8x1xf32>
    %c0_18 = arith.constant 0 : index
    %c0_19 = arith.constant 0 : index
    %21 = vector.load %arg10[%c0_18, %c0_19] : memref<1x1xf32, #tpu.memory_space<vmem>>, vector<1x1xf32>
    %22 = vector.broadcast %21 : vector<1x1xf32> to vector<8x1xf32>
    %23 = arith.addf %20, %22 : vector<8x1xf32>
    %c0_20 = arith.constant 0 : index
    %c0_21 = arith.constant 0 : index
    %24 = vector.load %arg11[%c0_20, %c0_21] : memref<1x10xf32, #tpu.memory_space<vmem>>, vector<1x10xf32>
    %cst_22 = arith.constant dense<0.000000e+00> : vector<8x10xf32>
    %25 = tpu.matmul %23, %24, %cst_22 {dimension_numbers = #tpu.dot_dimension_numbers<[1], [0], [0], [1], [0, 0, 1, 1], [], []>} : vector<8x1xf32>, vector<1x10xf32>, vector<8x10xf32> -> vector<8x10xf32>
    %c0_23 = arith.constant 0 : index
    %c0_24 = arith.constant 0 : index
    %26 = vector.load %arg12[%c0_23, %c0_24] : memref<1x10xf32, #tpu.memory_space<vmem>>, vector<1x10xf32>
    %27 = vector.broadcast %26 : vector<1x10xf32> to vector<8x10xf32>
    %28 = arith.addf %25, %27 : vector<8x10xf32>
    %29 = math.tanh %28 : vector<8x10xf32>
    %c0_25 = arith.constant 0 : index
    %c0_26 = arith.constant 0 : index
    %30 = vector.load %arg13[%c0_25, %c0_26] : memref<10x30xf32, #tpu.memory_space<vmem>>, vector<10x30xf32>
    %cst_27 = arith.constant dense<0.000000e+00> : vector<8x30xf32>
    %31 = tpu.matmul %29, %30, %cst_27 {dimension_numbers = #tpu.dot_dimension_numbers<[1], [0], [0], [1], [0, 0, 1, 1], [], []>} : vector<8x10xf32>, vector<10x30xf32>, vector<8x30xf32> -> vector<8x30xf32>
    %c0_28 = arith.constant 0 : index
    %c0_29 = arith.constant 0 : index
    %32 = vector.load %arg14[%c0_28, %c0_29] : memref<1x30xf32, #tpu.memory_space<vmem>>, vector<1x30xf32>
    %33 = vector.broadcast %32 : vector<1x30xf32> to vector<8x30xf32>
    %34 = arith.addf %31, %33 : vector<8x30xf32>
    %35 = math.tanh %34 : vector<8x30xf32>
    %c0_30 = arith.constant 0 : index
    %c0_31 = arith.constant 0 : index
    %36 = vector.load %arg15[%c0_30, %c0_31] : memref<30x60xf32, #tpu.memory_space<vmem>>, vector<30x60xf32>
    %cst_32 = arith.constant dense<0.000000e+00> : vector<8x60xf32>
    %37 = tpu.matmul %35, %36, %cst_32 {dimension_numbers = #tpu.dot_dimension_numbers<[1], [0], [0], [1], [0, 0, 1, 1], [], []>} : vector<8x30xf32>, vector<30x60xf32>, vector<8x60xf32> -> vector<8x60xf32>
    %c0_33 = arith.constant 0 : index
    %c0_34 = arith.constant 0 : index
    %38 = vector.load %arg16[%c0_33, %c0_34] : memref<1x60xf32, #tpu.memory_space<vmem>>, vector<1x60xf32>
    %39 = vector.broadcast %38 : vector<1x60xf32> to vector<8x60xf32>
    %40 = arith.addf %37, %39 : vector<8x60xf32>
    %41 = math.tanh %40 : vector<8x60xf32>
    %c0_35 = arith.constant 0 : index
    %c0_36 = arith.constant 0 : index
    %42 = vector.load %arg17[%c0_35, %c0_36] : memref<60x32xf32, #tpu.memory_space<vmem>>, vector<60x32xf32>
    %cst_37 = arith.constant dense<0.000000e+00> : vector<8x32xf32>
    %43 = tpu.matmul %41, %42, %cst_37 {dimension_numbers = #tpu.dot_dimension_numbers<[1], [0], [0], [1], [0, 0, 1, 1], [], []>} : vector<8x60xf32>, vector<60x32xf32>, vector<8x32xf32> -> vector<8x32xf32>
    %c0_38 = arith.constant 0 : index
    %c0_39 = arith.constant 0 : index
    %44 = vector.load %arg18[%c0_38, %c0_39] : memref<1x32xf32, #tpu.memory_space<vmem>>, vector<1x32xf32>
    %45 = vector.broadcast %44 : vector<1x32xf32> to vector<8x32xf32>
    %46 = arith.addf %43, %45 : vector<8x32xf32>
    %47 = arith.subf %0, %46 : vector<8x32xf32>
    %48 = arith.mulf %0, %0 : vector<8x32xf32>
    %cst_40 = arith.constant dense<0.000000e+00> : vector<8xf32>
    %49 = vector.multi_reduction <add>, %48, %cst_40 [1] : vector<8x32xf32> to vector<8xf32>
    %50 = vector.shape_cast %49 : vector<8xf32> to vector<8x1xf32>
    %51 = arith.mulf %46, %46 : vector<8x32xf32>
    %cst_41 = arith.constant dense<0.000000e+00> : vector<8xf32>
    %52 = vector.multi_reduction <add>, %51, %cst_41 [1] : vector<8x32xf32> to vector<8xf32>
    %53 = vector.shape_cast %52 : vector<8xf32> to vector<8x1xf32>
    %54 = arith.mulf %47, %47 : vector<8x32xf32>
    %cst_42 = arith.constant dense<0.000000e+00> : vector<8xf32>
    %55 = vector.multi_reduction <add>, %54, %cst_42 [1] : vector<8x32xf32> to vector<8xf32>
    %56 = vector.shape_cast %55 : vector<8xf32> to vector<8x1xf32>
    %57 = arith.mulf %0, %46 : vector<8x32xf32>
    %cst_43 = arith.constant dense<0.000000e+00> : vector<8xf32>
    %58 = vector.multi_reduction <add>, %57, %cst_43 [1] : vector<8x32xf32> to vector<8xf32>
    %59 = vector.shape_cast %58 : vector<8xf32> to vector<8x1xf32>
    %60 = math.sqrt %56 : vector<8x1xf32>
    %61 = math.rsqrt %50 : vector<8x1xf32>
    %62 = arith.mulf %60, %61 : vector<8x1xf32>
    %63 = math.sqrt %50 : vector<8x1xf32>
    %cst_44 = arith.constant 9.99999993E-9 : f32
    %64 = vector.broadcast %cst_44 : f32 to vector<8x1xf32>
    %65 = arith.maximumf %63, %64 : vector<8x1xf32>
    %66 = math.sqrt %53 : vector<8x1xf32>
    %cst_45 = arith.constant 9.99999993E-9 : f32
    %67 = vector.broadcast %cst_45 : f32 to vector<8x1xf32>
    %68 = arith.maximumf %66, %67 : vector<8x1xf32>
    %69 = arith.mulf %65, %68 : vector<8x1xf32>
    %70 = arith.divf %59, %69 : vector<8x1xf32>
    %c0_46 = arith.constant 0 : index
    %c0_47 = arith.constant 0 : index
    %71 = vector.load %arg19[%c0_46, %c0_47] : memref<3x10xf32, #tpu.memory_space<vmem>>, vector<1x10xf32>
    %cst_48 = arith.constant dense<0.000000e+00> : vector<8x10xf32>
    %72 = tpu.matmul %23, %71, %cst_48 {dimension_numbers = #tpu.dot_dimension_numbers<[1], [0], [0], [1], [0, 0, 1, 1], [], []>} : vector<8x1xf32>, vector<1x10xf32>, vector<8x10xf32> -> vector<8x10xf32>
    %c1 = arith.constant 1 : index
    %c0_49 = arith.constant 0 : index
    %73 = vector.load %arg19[%c1, %c0_49] : memref<3x10xf32, #tpu.memory_space<vmem>>, vector<1x10xf32>
    %74 = vector.broadcast %62 : vector<8x1xf32> to vector<8x10xf32>
    %75 = vector.broadcast %73 : vector<1x10xf32> to vector<8x10xf32>
    %76 = arith.mulf %74, %75 : vector<8x10xf32>
    %77 = arith.addf %72, %76 : vector<8x10xf32>
    %c2 = arith.constant 2 : index
    %c0_50 = arith.constant 0 : index
    %78 = vector.load %arg19[%c2, %c0_50] : memref<3x10xf32, #tpu.memory_space<vmem>>, vector<1x10xf32>
    %79 = vector.broadcast %70 : vector<8x1xf32> to vector<8x10xf32>
    %80 = vector.broadcast %78 : vector<1x10xf32> to vector<8x10xf32>
    %81 = arith.mulf %79, %80 : vector<8x10xf32>
    %82 = arith.addf %77, %81 : vector<8x10xf32>
    %c0_51 = arith.constant 0 : index
    %c0_52 = arith.constant 0 : index
    %83 = vector.load %arg20[%c0_51, %c0_52] : memref<1x10xf32, #tpu.memory_space<vmem>>, vector<1x10xf32>
    %84 = vector.broadcast %83 : vector<1x10xf32> to vector<8x10xf32>
    %85 = arith.addf %82, %84 : vector<8x10xf32>
    %86 = math.tanh %85 : vector<8x10xf32>
    %c0_53 = arith.constant 0 : index
    %c0_54 = arith.constant 0 : index
    %87 = vector.load %arg2[%c0_53, %c0_54] : memref<8x10xf32, #tpu.memory_space<vmem>>, vector<8x10xf32>
    %88 = arith.mulf %86, %87 : vector<8x10xf32>
    %c0_55 = arith.constant 0 : index
    %c0_56 = arith.constant 0 : index
    %89 = vector.load %arg21[%c0_55, %c0_56] : memref<10x2xf32, #tpu.memory_space<vmem>>, vector<10x2xf32>
    %cst_57 = arith.constant dense<0.000000e+00> : vector<8x2xf32>
    %90 = tpu.matmul %88, %89, %cst_57 {dimension_numbers = #tpu.dot_dimension_numbers<[1], [0], [0], [1], [0, 0, 1, 1], [], []>} : vector<8x10xf32>, vector<10x2xf32>, vector<8x2xf32> -> vector<8x2xf32>
    %c0_58 = arith.constant 0 : index
    %c0_59 = arith.constant 0 : index
    %91 = vector.load %arg22[%c0_58, %c0_59] : memref<1x2xf32, #tpu.memory_space<vmem>>, vector<1x2xf32>
    %92 = vector.broadcast %91 : vector<1x2xf32> to vector<8x2xf32>
    %93 = arith.addf %90, %92 : vector<8x2xf32>
    %cst_60 = arith.constant dense<0xFF800000> : vector<8xf32>
    %94 = vector.multi_reduction <maximumf>, %93, %cst_60 [1] : vector<8x2xf32> to vector<8xf32>
    %95 = vector.shape_cast %94 : vector<8xf32> to vector<8x1xf32>
    %96 = vector.broadcast %95 : vector<8x1xf32> to vector<8x2xf32>
    %97 = arith.subf %93, %96 : vector<8x2xf32>
    %98 = math.exp %97 : vector<8x2xf32>
    %cst_61 = arith.constant dense<0.000000e+00> : vector<8xf32>
    %99 = vector.multi_reduction <add>, %98, %cst_61 [1] : vector<8x2xf32> to vector<8xf32>
    %100 = vector.shape_cast %99 : vector<8xf32> to vector<8x1xf32>
    %101 = vector.broadcast %100 : vector<8x1xf32> to vector<8x2xf32>
    %102 = arith.divf %98, %101 : vector<8x2xf32>
    %c0_62 = arith.constant 0 : index
    %c0_63 = arith.constant 0 : index
    %103 = vector.load %arg23[%c0_62, %c0_63] : memref<8x128xf32, #tpu.memory_space<vmem>>, vector<8x32xf32>
    tpu.vector_store %arg23[%c0_62, %c0_63], %46 {strides = array<i32>} : memref<8x128xf32, #tpu.memory_space<vmem>>, vector<8x32xf32>,
    %c0_64 = arith.constant 0 : index
    %c32 = arith.constant 32 : index
    %104 = vector.load %arg23[%c0_64, %c32] : memref<8x128xf32, #tpu.memory_space<vmem>>, vector<8x1xf32>
    tpu.vector_store %arg23[%c0_64, %c32], %23 {strides = array<i32>} : memref<8x128xf32, #tpu.memory_space<vmem>>, vector<8x1xf32>,
    %c0_65 = arith.constant 0 : index
    %c33 = arith.constant 33 : index
    %105 = vector.load %arg23[%c0_65, %c33] : memref<8x128xf32, #tpu.memory_space<vmem>>, vector<8x1xf32>
    tpu.vector_store %arg23[%c0_65, %c33], %62 {strides = array<i32>} : memref<8x128xf32, #tpu.memory_space<vmem>>, vector<8x1xf32>,
    %c0_66 = arith.constant 0 : index
    %c34 = arith.constant 34 : index
    %106 = vector.load %arg23[%c0_66, %c34] : memref<8x128xf32, #tpu.memory_space<vmem>>, vector<8x1xf32>
    tpu.vector_store %arg23[%c0_66, %c34], %70 {strides = array<i32>} : memref<8x128xf32, #tpu.memory_space<vmem>>, vector<8x1xf32>,
    %c0_67 = arith.constant 0 : index
    %c35 = arith.constant 35 : index
    %107 = vector.load %arg23[%c0_67, %c35] : memref<8x128xf32, #tpu.memory_space<vmem>>, vector<8x2xf32>
    tpu.vector_store %arg23[%c0_67, %c35], %102 {strides = array<i32>} : memref<8x128xf32, #tpu.memory_space<vmem>>, vector<8x2xf32>,
    %cst_68 = arith.constant 0.000000e+00 : f32
    %108 = vector.broadcast %cst_68 : f32 to vector<8x91xf32>
    %c0_69 = arith.constant 0 : index
    %c37 = arith.constant 37 : index
    %109 = vector.load %arg23[%c0_69, %c37] : memref<8x128xf32, #tpu.memory_space<vmem>>, vector<8x91xf32>
    tpu.vector_store %arg23[%c0_69, %c37], %108 {strides = array<i32>} : memref<8x128xf32, #tpu.memory_space<vmem>>, vector<8x91xf32>,
    return
  }
  func.func @transform_0(%arg0: i32) -> (i32, i32) {
    %c0_i32 = arith.constant 0 : i32
    %c0_i32_0 = arith.constant 0 : i32
    return %arg0, %c0_i32 : i32, i32
  }
  func.func @transform_1(%arg0: i32) -> (i32, i32) {
    %c0_i32 = arith.constant 0 : i32
    %c0_i32_0 = arith.constant 0 : i32
    return %arg0, %c0_i32 : i32, i32
  }
  func.func @transform_2(%arg0: i32) -> (i32, i32) {
    %c0_i32 = arith.constant 0 : i32
    %c0_i32_0 = arith.constant 0 : i32
    %c0_i32_1 = arith.constant 0 : i32
    return %c0_i32, %c0_i32_0 : i32, i32
  }
  func.func @transform_3(%arg0: i32) -> (i32, i32) {
    %c0_i32 = arith.constant 0 : i32
    %c0_i32_0 = arith.constant 0 : i32
    %c0_i32_1 = arith.constant 0 : i32
    return %c0_i32, %c0_i32_0 : i32, i32
  }
  func.func @transform_4(%arg0: i32) -> (i32, i32) {
    %c0_i32 = arith.constant 0 : i32
    %c0_i32_0 = arith.constant 0 : i32
    %c0_i32_1 = arith.constant 0 : i32
    return %c0_i32, %c0_i32_0 : i32, i32
  }
  func.func @transform_5(%arg0: i32) -> (i32, i32) {
    %c0_i32 = arith.constant 0 : i32
    %c0_i32_0 = arith.constant 0 : i32
    %c0_i32_1 = arith.constant 0 : i32
    return %c0_i32, %c0_i32_0 : i32, i32
  }
  func.func @transform_6(%arg0: i32) -> (i32, i32) {
    %c0_i32 = arith.constant 0 : i32
    %c0_i32_0 = arith.constant 0 : i32
    %c0_i32_1 = arith.constant 0 : i32
    return %c0_i32, %c0_i32_0 : i32, i32
  }
  func.func @transform_7(%arg0: i32) -> (i32, i32) {
    %c0_i32 = arith.constant 0 : i32
    %c0_i32_0 = arith.constant 0 : i32
    %c0_i32_1 = arith.constant 0 : i32
    return %c0_i32, %c0_i32_0 : i32, i32
  }
  func.func @transform_8(%arg0: i32) -> (i32, i32) {
    %c0_i32 = arith.constant 0 : i32
    %c0_i32_0 = arith.constant 0 : i32
    %c0_i32_1 = arith.constant 0 : i32
    return %c0_i32, %c0_i32_0 : i32, i32
  }
  func.func @transform_9(%arg0: i32) -> (i32, i32) {
    %c0_i32 = arith.constant 0 : i32
    %c0_i32_0 = arith.constant 0 : i32
    %c0_i32_1 = arith.constant 0 : i32
    return %c0_i32, %c0_i32_0 : i32, i32
  }
  func.func @transform_10(%arg0: i32) -> (i32, i32) {
    %c0_i32 = arith.constant 0 : i32
    %c0_i32_0 = arith.constant 0 : i32
    %c0_i32_1 = arith.constant 0 : i32
    return %c0_i32, %c0_i32_0 : i32, i32
  }
  func.func @transform_11(%arg0: i32) -> (i32, i32) {
    %c0_i32 = arith.constant 0 : i32
    %c0_i32_0 = arith.constant 0 : i32
    %c0_i32_1 = arith.constant 0 : i32
    return %c0_i32, %c0_i32_0 : i32, i32
  }
  func.func @transform_12(%arg0: i32) -> (i32, i32) {
    %c0_i32 = arith.constant 0 : i32
    %c0_i32_0 = arith.constant 0 : i32
    %c0_i32_1 = arith.constant 0 : i32
    return %c0_i32, %c0_i32_0 : i32, i32
  }
  func.func @transform_13(%arg0: i32) -> (i32, i32) {
    %c0_i32 = arith.constant 0 : i32
    %c0_i32_0 = arith.constant 0 : i32
    %c0_i32_1 = arith.constant 0 : i32
    return %c0_i32, %c0_i32_0 : i32, i32
  }
  func.func @transform_14(%arg0: i32) -> (i32, i32) {
    %c0_i32 = arith.constant 0 : i32
    %c0_i32_0 = arith.constant 0 : i32
    %c0_i32_1 = arith.constant 0 : i32
    return %c0_i32, %c0_i32_0 : i32, i32
  }
  func.func @transform_15(%arg0: i32) -> (i32, i32) {
    %c0_i32 = arith.constant 0 : i32
    %c0_i32_0 = arith.constant 0 : i32
    %c0_i32_1 = arith.constant 0 : i32
    return %c0_i32, %c0_i32_0 : i32, i32
  }
  func.func @transform_16(%arg0: i32) -> (i32, i32) {
    %c0_i32 = arith.constant 0 : i32
    %c0_i32_0 = arith.constant 0 : i32
    %c0_i32_1 = arith.constant 0 : i32
    return %c0_i32, %c0_i32_0 : i32, i32
  }
  func.func @transform_17(%arg0: i32) -> (i32, i32) {
    %c0_i32 = arith.constant 0 : i32
    %c0_i32_0 = arith.constant 0 : i32
    %c0_i32_1 = arith.constant 0 : i32
    return %c0_i32, %c0_i32_0 : i32, i32
  }
  func.func @transform_18(%arg0: i32) -> (i32, i32) {
    %c0_i32 = arith.constant 0 : i32
    %c0_i32_0 = arith.constant 0 : i32
    %c0_i32_1 = arith.constant 0 : i32
    return %c0_i32, %c0_i32_0 : i32, i32
  }
  func.func @transform_19(%arg0: i32) -> (i32, i32) {
    %c0_i32 = arith.constant 0 : i32
    %c0_i32_0 = arith.constant 0 : i32
    %c0_i32_1 = arith.constant 0 : i32
    return %c0_i32, %c0_i32_0 : i32, i32
  }
  func.func @transform_20(%arg0: i32) -> (i32, i32) {
    %c0_i32 = arith.constant 0 : i32
    %c0_i32_0 = arith.constant 0 : i32
    %c0_i32_1 = arith.constant 0 : i32
    return %c0_i32, %c0_i32_0 : i32, i32
  }
  func.func @transform_21(%arg0: i32) -> (i32, i32) {
    %c0_i32 = arith.constant 0 : i32
    %c0_i32_0 = arith.constant 0 : i32
    %c0_i32_1 = arith.constant 0 : i32
    return %c0_i32, %c0_i32_0 : i32, i32
  }
  func.func @transform_22(%arg0: i32) -> (i32, i32) {
    %c0_i32 = arith.constant 0 : i32
    %c0_i32_0 = arith.constant 0 : i32
    return %arg0, %c0_i32 : i32, i32
  }
}

</mosaic_0001>

<bundles_post_ra>
// kernel: tpu_custom_call.1
= control target key start
LH: loop header
LB: loop body
LE: loop exit
PB: predicated region body
PF: predicated region fallthrough
CT: control target
= control target key end

     0   :  { %s1656_s0 = inlined_call_operand.vmem [shape: f32[8,32], index: 0, kind: input, shape index: {}]   ;;  %s1657_s1 = inlined_call_operand.vmem [shape: f32[8,10], index: 1, kind: input, shape index: {}]   ;;  %s1658_s2 = inlined_call_operand.vmem [shape: f32[32,60], index: 2, kind: input, shape index: {}]   ;;  %s1659_s3 = inlined_call_operand.vmem [shape: f32[1,60], index: 3, kind: input, shape index: {}]   ;;  %s1660_s4 = inlined_call_operand.vmem [shape: f32[60,30], index: 4, kind: input, shape index: {}]   ;;  %s1661_s5 = inlined_call_operand.vmem [shape: f32[1,30], index: 5, kind: input, shape index: {}]   ;;  %s1662_s6 = inlined_call_operand.vmem [shape: f32[30,10], index: 6, kind: input, shape index: {}]   ;;  %s1663_s7 = inlined_call_operand.vmem [shape: f32[1,10], index: 7, kind: input, shape index: {}]   ;;  %s1664_s8 = inlined_call_operand.vmem [shape: f32[10,1], index: 8, kind: input, shape index: {}]   ;;  %s1665_s9 = inlined_call_operand.<no memory space> [shape: f32[1,1], index: 9, kind: input, shape index: {}]   ;;  %s1666_s10 = inlined_call_operand.vmem [shape: f32[1,10], index: 10, kind: input, shape index: {}]   ;;  %s1667_s11 = inlined_call_operand.vmem [shape: f32[1,10], index: 11, kind: input, shape index: {}]   ;;  %s1668_s12 = inlined_call_operand.vmem [shape: f32[10,30], index: 12, kind: input, shape index: {}]   ;;  %s1669_s13 = inlined_call_operand.vmem [shape: f32[1,30], index: 13, kind: input, shape index: {}]   ;;  %s1670_s14 = inlined_call_operand.vmem [shape: f32[30,60], index: 14, kind: input, shape index: {}]   ;;  %s1671_s15 = inlined_call_operand.vmem [shape: f32[1,60], index: 15, kind: input, shape index: {}]   ;;  %s1672_s16 = inlined_call_operand.vmem [shape: f32[60,32], index: 16, kind: input, shape index: {}]   ;;  %s1673_s17 = inlined_call_operand.vmem [shape: f32[1,32], index: 17, kind: input, shape index: {}]   ;;  %s1674_s18 = inlined_call_operand.vmem [shape: f32[3,10], index: 18, kind: input, shape index: {}]   ;;  %s1675_s19 = inlined_call_operand.vmem [shape: f32[1,10], index: 19, kind: input, shape index: {}]   ;;  %s1676_s20 = inlined_call_operand.vmem [shape: f32[10,2], index: 20, kind: input, shape index: {}]   ;;  %s1677_s21 = inlined_call_operand.vmem [shape: f32[1,2], index: 21, kind: input, shape index: {}]   ;;  %s1678_s22 = inlined_call_operand.hbm [shape: f32[8,128], index: 22, kind: output, shape index: {}]  }
   0x1   :  { %1682 = sst [smem:[#allocation6_spill]] %s1656_s0  ;;  %v27_v0 = vstv %s1665_s9 }
   0x2   :  { %1683 = sst [smem:[#allocation7_spill]] %s1657_s1  ;;  %28 = vst [vmem:[#allocation2] sm:$0x1] %v27_v0 }
   0x3   :  { %1684 = sst [smem:[#allocation8_spill]] %s1658_s2 }
   0x4   :  { %1685 = sst [smem:[#allocation9_spill]] %s1659_s3 }
   0x5   :  { %1686 = sst [smem:[#allocation10_spill]] %s1660_s4 }
   0x6   :  { %1687 = sst [smem:[#allocation11_spill]] %s1661_s5 }
   0x7   :  { %1688 = sst [smem:[#allocation12_spill]] %s1662_s6 }
   0x8   :  { %s1689_s4 = sld [smem:[#allocation8_spill]]  ;;  %v1288_v2 = vmov 0.0   ;;  %vm1289_vm0 = vmmov 0  }
   0x9   :  { %1133 = vmatprep.subr.mxu0 %v1288_v2  ;;  %1141 = vmatprep.mubr.msk.f32.mxu0 %vm1289_vm0, %v1288_v2 }
   0xa   :  { %1144 = vmatprep.subr.mxu1 %v1288_v2 }
   0xe   :  { %v78_v1 = vld [vmem:[%s1689_s4 + $0x18] sm:$0xff]  ;;  %v77_v3 = vld [vmem:[%s1689_s4 + $0x10] sm:$0xff] }
   0xf   :  { %1134 = vmatpush3.msra.mxu0 %v78_v1 }
  0x10   :  { %29 = vsyncpa [#allocation4], 0  ;;  %1135 = vmatprep.subr.mxu0 %v1288_v2  ;;  %v76_v4 = vld [vmem:[%s1689_s4 + $0x8] sm:$0xff]  ;;  %1160 = vmatprep.mubr.msk.f32.mxu1 %vm1289_vm0, %v1288_v2  ;;  %v75_v5 = vld [vmem:[%s1689_s4] sm:$0xff]  ;;  %s1690_s26 = sld [smem:[#allocation6_spill]]  ;;  %vm86_vm1 = vcmask 261120  }
  0x11   :  { %1136 = vmatpush3.msra.mxu0 %v77_v3  ;;  %s1691_s3 = sld [smem:[#allocation10_spill]]  ;;  %vm180_vm2 = vcmask 1043456   ;;  %vm176_vm3 = vcmask 490496   ;;  %vm270_vm4 = vcmask 1045504   ;;  %vm266_vm5 = vcmask 244736   ;;  %v345_v30 = vld [vmem:[%s1664_s8] sm:$0xff] }
  0x12   :  { %1137 = vmatprep.subr.mxu0 %v1288_v2  ;;  %s1692_s29 = sld [smem:[#allocation9_spill]]  ;;  %v346_v29 = vld [vmem:[%s1664_s8 + $0x8] sm:$0x3]  ;;  %vm358_vm6 = vcmask 1041408   ;;  %v432_v31 = vld [vmem:[%s1666_s10] sm:$0x1] }
  0x13   :  { %1138 = vmatpush3.msra.mxu0 %v76_v4  ;;  %s1693_s4 = sld [smem:[#allocation12_spill]]  ;;  %vm444_vm7 = vcmask 1040384   ;;  %v1061_v32 = vld [vmem:[%s1663_s7] ss:$0 sm:$0xff]  ;;  %vm354_vm8 = vcmask 80896   ;;  %vm440_vm9 = vcmask 7168  }
  0x14   :  { %1139 = vmatprep.subr.mxu0 %v1288_v2  ;;  %v1064_v37 = vld [vmem:[#allocation2] ss:$0 sm:$0xff]  ;;  %v520_v41 = vld [vmem:[%s1668_s12 + $0x8] sm:$0x3]  ;;  %v608_v48 = vld [vmem:[%s1670_s14 + $0x18] sm:$0x3f] }
  0x15   :  { %1140 = vmatpush3.msra.mxu0 %v75_v5  ;;  %v519_v42 = vld [vmem:[%s1668_s12] sm:$0xff]  ;;  %v607_v49 = vld [vmem:[%s1670_s14 + $0x10] sm:$0xff]  ;;  %v606_v50 = vld [vmem:[%s1670_s14 + $0x8] sm:$0xff]  ;;  %s1695_s7 = sld [smem:[#allocation7_spill]]  ;;  %s1292_s10 = smov [#allocation3]  }
  0x16   :  { %v1434_v6 = vld [vmem:[%s1690_s26] sm:$0xff]  ;;  %1163 = vmatprep.subr.mxu0 %v1288_v2  ;;  %s1694_s26 = sld [smem:[#allocation11_spill]]  ;;  %v700_v58 = vld [vmem:[%s1672_s16 + $0x38] sm:$0xf]  ;;  %v699_v59 = vld [vmem:[%s1672_s16 + $0x30] sm:$0xff]  ;;  %s1048_s23 = sshll.u32 %s1292_s10, 4  ;;  %s1049_s23 = int_to_ptr.vmem [resolvable:$true] %s1048_s23 }
  0x17   :  { %1142 = vmatmul.mubr.msk.f32.vlgmr.msra.gmra.mxu0 %vm86_vm1, %v1434_v6  ;;  %v168_v7 = vld [vmem:[%s1691_s3 + $0x38] sm:$0xf]  ;;  %v167_v8 = vld [vmem:[%s1691_s3 + $0x30] sm:$0xff]  ;;  %v166_v9 = vld [vmem:[%s1691_s3 + $0x28] sm:$0xff]  ;;  %v785_v3 = vmul.f32 %v1434_v6, %v1434_v6  ;;  %s1266_s9 = scalar_lea.vmem %s1049_s23, 128  ;;  %p1271_p1 = scmp.lt.s32.totalorder %s1049_s23, %s1049_s23 }
  0x18   :  { %1171 = vmatprep.mubr.msk.f32.mxu0 %vm1289_vm0, %v1288_v2  ;;  %1145 = vmatpush3.msk.msra.mxu1 %vm180_vm2, %v168_v7  ;;  %v165_v10 = vld [vmem:[%s1691_s3 + $0x20] sm:$0xff]  ;;  %v164_v11 = vld [vmem:[%s1691_s3 + $0x18] sm:$0xff]  ;;  %v163_v12 = vld [vmem:[%s1691_s3 + $0x10] sm:$0xff]  ;;  %p1267_p0 = scmp.ne.s32.totalorder %s1049_s23, %s1266_s9  ;;  %p1272_p2 = scmp.lt.s32.totalorder %s1266_s9, %s1266_s9 }
  0x19   :  { %1146 = vmatprep.subr.mxu1 %v1288_v2  ;;  %v162_v13 = vld [vmem:[%s1691_s3 + $0x8] sm:$0xff]  ;;  %v161_v14 = vld [vmem:[%s1691_s3] sm:$0xff]  ;;  %v258_v20 = vld [vmem:[%s1693_s4 + $0x18] sm:$0x3f]  ;;  %v786_v4 = vsel %vm86_vm1, %v785_v3, 0.0 }
  0x1a   :  { %1147 = vmatpush3.msra.mxu1 %v167_v8  ;;  %v1056_v15 = vld [vmem:[%s1692_s29] ss:$0 sm:$0xff]  ;;  %v257_v21 = vld [vmem:[%s1693_s4 + $0x10] sm:$0xff]  ;;  %1164 = vmatpush3.msk.msra.mxu0 %vm270_vm4, %v258_v20  ;;  %v256_v22 = vld [vmem:[%s1693_s4 + $0x8] sm:$0xff]  ;;  %p1273_p3 = por %p1272_p2, %p1271_p1 }
  0x1b   :  { %1148 = vmatprep.subr.mxu1 %v1288_v2  ;;  %1165 = vmatprep.subr.mxu0 %v1288_v2  ;;  %v255_v23 = vld [vmem:[%s1693_s4] sm:$0xff]  ;;  %v698_v60 = vld [vmem:[%s1672_s16 + $0x28] sm:$0xff]  ;;  %v696_v62 = vld [vmem:[%s1672_s16 + $0x18] sm:$0xff] }
  0x1c   :  { %1149 = vmatpush3.msra.mxu1 %v166_v9  ;;  %1166 = vmatpush3.msra.mxu0 %v257_v21  ;;  %v1058_v24 = vld [vmem:[%s1694_s26] ss:$0 sm:$0xff]  ;;  %v695_v63 = vld [vmem:[%s1672_s16 + $0x10] sm:$0xff]  ;;  %v694_v0 = vld [vmem:[%s1672_s16 + $0x8] sm:$0xff]  ;;  %p1274_p4 = pnand %p1273_p3, %p1267_p0 }
  0x1d   :  { %1150 = vmatprep.subr.mxu1 %v1288_v2  ;;  %1167 = vmatprep.subr.mxu0 %v1288_v2  ;;  %v1067_v43 = vld [vmem:[%s1667_s11] ss:$0 sm:$0xff] }
  0x1e   :  { %1151 = vmatpush3.msra.mxu1 %v165_v10  ;;  %1168 = vmatpush3.msra.mxu0 %v256_v22  ;;  %v605_v51 = vld [vmem:[%s1670_s14] sm:$0xff] }
  0x1f   :  { %1152 = vmatprep.subr.mxu1 %v1288_v2  ;;  %1169 = vmatprep.subr.mxu0 %v1288_v2  ;;  %v1070_v52 = vld [vmem:[%s1669_s13] ss:$0 sm:$0xff] }
  0x20   :  { %1153 = vmatpush3.msra.mxu1 %v164_v11  ;;  %1170 = vmatpush3.msra.mxu0 %v255_v23  ;;  %v829_v56 = vld [vmem:[%s1674_s18] sm:$0x1] }
  0x21   :  { %1154 = vmatprep.subr.mxu1 %v1288_v2  ;;  %1174 = vmatprep.subr.mxu0 %v1288_v2  ;;  %v697_v61 = vld [vmem:[%s1672_s16 + $0x20] sm:$0xff] }
  0x22   :  { %1155 = vmatpush3.msra.mxu1 %v163_v12  ;;  %v693_v1 = vld [vmem:[%s1672_s16] sm:$0xff]  ;;  %787 = vadd.xlane.f32.xlu0 %v786_v4 }
  0x23   :  { %1156 = vmatprep.subr.mxu1 %v1288_v2  ;;  %v1073_v5 = vld [vmem:[%s1671_s15] ss:$0 sm:$0xff] }
  0x24   :  { %1157 = vmatpush3.msra.mxu1 %v162_v13  ;;  %v1076_v13 = vld [vmem:[%s1673_s17] ss:$0 sm:$0xff] }
  0x25   :  { %1158 = vmatprep.subr.mxu1 %v1288_v2 }
  0x26   :  { %1159 = vmatpush3.msra.mxu1 %v161_v14 }
  0x27   :  { %1181 = vmatprep.subr.mxu1 %v1288_v2 }
  0xd7   :  { %v156_v16 = vpop.f32.mrf.mxu0 }
  0xd8   :  { %v157_v17 = vadd.f32 %v1056_v15, %v156_v16 }
  0xd9   :  { %v1143_v18 = vpop.f32.mrf.mxu0 }
  0xda   :  { %1240 = vtanh.f32 %v157_v17 }
  0xe7   :  { %v1241_v19 = vpop.eup %1240 }
  0xe8   :  { %1161 = vmatmul.mubr.msk.f32.vlgmr.msra.gmra.mxu1 %vm176_vm3, %v1241_v19 }
  0xe9   :  { %1183 = vmatprep.mubr.msk.f32.mxu1 %vm1289_vm0, %v1288_v2  ;;  %1182 = vmatpush3.msk.msra.mxu1 %vm444_vm7, %v432_v31 }
  0xea   :  { %1193 = vmatprep.subr.mxu1 %v1288_v2 }
 0x1a8   :  { %v250_v25 = vpop.f32.mrf.mxu1 }
 0x1a9   :  { %v251_v26 = vadd.f32 %v1058_v24, %v250_v25  ;;  %v928_v24 = vld [vmem:[%s1676_s20 + $0x8] sm:$0x3]  ;;  %v927_v25 = vld [vmem:[%s1676_s20] sm:$0xff] }
 0x1aa   :  { %v1162_v27 = vpop.f32.mrf.mxu1 }
 0x1ab   :  { %1242 = vtanh.f32 %v251_v26  ;;  %v788_v26 = vpop.xlane.xlu0 %787 }
 0x1ac   :  { %vm812_vm10 = vcmp.eq.f32.partialorder %v788_v26, inf  ;;  %vm814_vm11 = vcmp.eq.f32.partialorder %v788_v26, 0.0 }
 0x1b8   :  { %v1243_v28 = vpop.eup %1242 }
 0x1b9   :  { %1172 = vmatmul.mubr.msk.f32.vlgmr.msra.gmra.mxu0 %vm266_vm5, %v1243_v28 }
 0x1ba   :  { %1178 = vmatprep.mubr.msk.f32.mxu0 %vm1289_vm0, %v1288_v2  ;;  %1175 = vmatpush3.msk.msra.mxu0 %vm358_vm6, %v346_v29 }
 0x1bb   :  { %1176 = vmatprep.subr.mxu0 %v1288_v2 }
 0x1bc   :  { %1177 = vmatpush3.msra.mxu0 %v345_v30  ;;  %v815_v30 = vand.u32 2147483648, %v788_v26 }
 0x1bd   :  { %1186 = vmatprep.subr.mxu0 %v1288_v2 }
 0x279   :  { %v340_v33 = vpop.f32.mrf.mxu0 }
 0x27a   :  { %v341_v34 = vadd.f32 %v1061_v32, %v340_v33 }
 0x27b   :  { %v1173_v35 = vpop.f32.mrf.mxu0 }
 0x27c   :  { %1244 = vtanh.f32 %v341_v34 }
 0x289   :  { %v1245_v36 = vpop.eup %1244 }
 0x28a   :  { %1179 = vmatmul.mubr.msk.f32.vlgmr.msra.gmra.mxu0 %vm354_vm8, %v1245_v36 }
 0x28b   :  { %1190 = vmatprep.mubr.msk.f32.mxu0 %vm1289_vm0, %v1288_v2  ;;  %1187 = vmatpush3.msk.msra.mxu0 %vm358_vm6, %v520_v41 }
 0x28c   :  { %1188 = vmatprep.subr.mxu0 %v1288_v2 }
 0x28d   :  { %1189 = vmatpush3.msra.mxu0 %v519_v42 }
 0x28e   :  { %1204 = vmatprep.subr.mxu0 %v1288_v2 }
 0x34a   :  { %v428_v38 = vpop.f32.mrf.mxu0 }
 0x34b   :  { %v1524_v39 = vadd.f32 %v1064_v37, %v428_v38 }
 0x34c   :  { %v1180_v40 = vpop.f32.mrf.mxu0 }
 0x34d   :  { %1184 = vmatmul.mubr.msk.f32.vlgmr.msra.gmra.mxu1 %vm440_vm9, %v1524_v39 }
 0x34e   :  { %1201 = vmatprep.mubr.msk.f32.mxu1 %vm1289_vm0, %v1288_v2  ;;  %1194 = vmatpush3.msk.msra.mxu1 %vm270_vm4, %v608_v48  ;;  %v1079_v48 = vld [vmem:[%s1674_s18 + $0x1] ss:$0 sm:$0xff]  ;;  %vm1038_vm4 = vcmask 302360  }
 0x34f   :  { %1195 = vmatprep.subr.mxu1 %v1288_v2 }
 0x350   :  { %1196 = vmatpush3.msra.mxu1 %v607_v49 }
 0x351   :  { %1197 = vmatprep.subr.mxu1 %v1288_v2 }
 0x352   :  { %1198 = vmatpush3.msra.mxu1 %v606_v50 }
 0x353   :  { %1199 = vmatprep.subr.mxu1 %v1288_v2 }
 0x354   :  { %1200 = vmatpush3.msra.mxu1 %v605_v51  ;;  %v1082_v51 = vld [vmem:[%s1674_s18 + $0x2] ss:$0 sm:$0xff] }
 0x355   :  { %1223 = vmatprep.subr.mxu1 %v1288_v2 }
 0x40d   :  { %v514_v44 = vpop.f32.mrf.mxu1 }
 0x40e   :  { %v515_v45 = vadd.f32 %v1067_v43, %v514_v44 }
 0x40f   :  { %v1185_v46 = vpop.f32.mrf.mxu1 }
 0x410   :  { %1246 = vtanh.f32 %v515_v45 }
 0x41d   :  { %v1247_v47 = vpop.eup %1246 }
 0x41e   :  { %1191 = vmatmul.mubr.msk.f32.vlgmr.msra.gmra.mxu0 %vm354_vm8, %v1247_v47 }
 0x41f   :  { %1220 = vmatprep.mubr.msk.f32.mxu0 %vm1289_vm0, %v1288_v2  ;;  %1205 = vmatpush3.msk.msra.mxu0 %vm180_vm2, %v700_v58  ;;  %vm1030_vm2 = vcmask 277768  }
 0x420   :  { %1206 = vmatprep.subr.mxu0 %v1288_v2 }
 0x421   :  { %1207 = vmatpush3.msra.mxu0 %v699_v59  ;;  %v925_v59 = vld [vmem:[%s1695_s7] sm:$0xff] }
 0x422   :  { %1208 = vmatprep.subr.mxu0 %v1288_v2 }
 0x423   :  { %1209 = vmatpush3.msra.mxu0 %v698_v60 }
 0x424   :  { %1210 = vmatprep.subr.mxu0 %v1288_v2 }
 0x425   :  { %1211 = vmatpush3.msra.mxu0 %v697_v61 }
 0x426   :  { %1212 = vmatprep.subr.mxu0 %v1288_v2 }
 0x427   :  { %1213 = vmatpush3.msra.mxu0 %v696_v62  ;;  %v1084_v62 = vld [vmem:[%s1677_s21] ss:$0 sm:$0xff]  ;;  %s1291_s21 = smov 35  }
 0x428   :  { %1214 = vmatprep.subr.mxu0 %v1288_v2 }
 0x429   :  { %1215 = vmatpush3.msra.mxu0 %v695_v63 }
 0x42a   :  { %1216 = vmatprep.subr.mxu0 %v1288_v2 }
 0x42b   :  { %1217 = vmatpush3.msra.mxu0 %v694_v0 }
 0x42c   :  { %1218 = vmatprep.subr.mxu0 %v1288_v2 }
 0x42d   :  { %1219 = vmatpush3.msra.mxu0 %v693_v1 }
 0x4de   :  { %v600_v53 = vpop.f32.mrf.mxu0 }
 0x4df   :  { %v601_v54 = vadd.f32 %v1070_v52, %v600_v53 }
 0x4e0   :  { %v1192_v55 = vpop.f32.mrf.mxu0 }
 0x4e1   :  { %1248 = vtanh.f32 %v601_v54 }
 0x4ee   :  { %v1249_v57 = vpop.eup %1248 }
 0x4ef   :  { %1202 = vmatmul.mubr.msk.f32.vlgmr.msra.gmra.mxu1 %vm266_vm5, %v1249_v57  ;;  %vm1040_vm5 = vcmask 1047848  }
 0x4f0   :  { %1224 = vmatpush3.msk.msra.mxu1 %vm444_vm7, %v829_v56  ;;  %1225 = vmatprep.mubr.msk.f32.mxu1 %vm1289_vm0, %v1288_v2  ;;  %v1083_v56 = vld [vmem:[%s1675_s19] ss:$0 sm:$0xff]  ;;  %s1290_s19 = smov 32  }
 0x4f1   :  { %1228 = vmatprep.subr.mxu1 %v1288_v2 }
 0x4f3   :  { %1226 = vmatmul.mubr.msk.f32.vlgmr.msra.gmra.mxu1 %vm440_vm9, %v1524_v39 }
 0x4f4   :  { %1232 = vmatprep.mubr.msk.f32.mxu1 %vm1289_vm0, %v1288_v2  ;;  %1229 = vmatpush3.msk.msra.mxu1 %vm358_vm6, %v928_v24  ;;  %vm1012_vm0 = vcmask 15360  }
 0x4f5   :  { %1230 = vmatprep.subr.mxu1 %v1288_v2 }
 0x4f6   :  { %1231 = vmatpush3.msra.mxu1 %v927_v25 }
 0x5af   :  { %v688_v7 = vpop.f32.mrf.mxu1 }
 0x5b0   :  { %v689_v8 = vadd.f32 %v1073_v5, %v688_v7 }
 0x5b1   :  { %v1203_v9 = vpop.f32.mrf.mxu1 }
 0x5b2   :  { %1250 = vtanh.f32 %v689_v8 }
 0x5b3   :  { %v905_v10 = vpop.f32.mrf.mxu1  ;;  %1252 = vrsqrt.f32 %v788_v26 }
 0x5b5   :  { %v1227_v11 = vpop.f32.mrf.mxu1 }
 0x5bf   :  { %v1251_v12 = vpop.eup %1250 }
 0x5c0   :  { %1221 = vmatmul.mubr.msk.f32.vlgmr.msra.gmra.mxu0 %vm176_vm3, %v1251_v12  ;;  %v1253_v28 = vpop.eup %1252  ;;  %vm1032_vm3 = vcmask 285968  }
 0x5c1   :  { %v811_v29 = vmul.f32 %v1253_v28, %v788_v26 }
 0x5c3   :  { %v813_v31 = vsel %vm812_vm10, %v788_v26, %v811_v29 }
 0x5c4   :  { %v816_v34 = vsel %vm814_vm11, %v815_v30, %v813_v31 }
 0x5c5   :  { %v817_v40 = vmax.f32 %v816_v34, 1e-08 }
 0x680   :  { %v780_v14 = vpop.f32.mrf.mxu0 }
 0x681   :  { %v781_v15 = vadd.f32 %v1076_v13, %v780_v14 }
 0x682   :  { %v1222_v16 = vpop.f32.mrf.mxu0 }
 0x683   :  { %1024 = vst.msk [vmem:[#allocation3] sm:$0xff] %vm86_vm1, %v781_v15  ;;  %v789_v17 = vmul.f32 %v781_v15, %v781_v15  ;;  %v784_v18 = vsub.f32 %v1434_v6, %v781_v15  ;;  %v797_v22 = vmul.f32 %v781_v15, %v1434_v6 }
 0x685   :  { %v790_v19 = vsel %vm86_vm1, %v789_v17, 0.0  ;;  %v793_v20 = vmul.f32 %v784_v18, %v784_v18  ;;  %v798_v23 = vsel %vm86_vm1, %v797_v22, 0.0 }
 0x686   :  { %791 = vadd.xlane.f32.xlu0 %v790_v19 }
 0x687   :  { %v794_v21 = vsel %vm86_vm1, %v793_v20, 0.0  ;;  %vm1028_vm1 = vcmask 269568  }
 0x688   :  { %795 = vadd.xlane.f32.xlu1 %v794_v21 }
 0x68c   :  { %799 = vadd.xlane.f32.xlu1 %v798_v23 }
 0x70f   :  { %v792_v6 = vpop.xlane.xlu0 %791 }
 0x710   :  { %1254 = vrsqrt.f32 %v792_v6  ;;  %vm820_vm12 = vcmp.eq.f32.partialorder %v792_v6, inf  ;;  %v823_v35 = vand.u32 2147483648, %v792_v6  ;;  %vm822_vm13 = vcmp.eq.f32.partialorder %v792_v6, 0.0 }
 0x711   :  { %v796_v27 = vpop.xlane.xlu1 %795 }
 0x712   :  { %1256 = vrsqrt.f32 %v796_v27  ;;  %vm803_vm14 = vcmp.eq.f32.partialorder %v796_v27, inf  ;;  %v806_v45 = vand.u32 2147483648, %v796_v27  ;;  %vm805_vm15 = vcmp.eq.f32.partialorder %v796_v27, 0.0 }
 0x715   :  { %v800_v52 = vpop.xlane.xlu1 %799 }
 0x71d   :  { %v1255_v32 = vpop.eup %1254 }
 0x71e   :  { %v819_v33 = vmul.f32 %v1255_v32, %v792_v6 }
 0x71f   :  { %v1257_v37 = vpop.eup %1256 }
 0x720   :  { %v821_v36 = vsel %vm820_vm12, %v792_v6, %v819_v33  ;;  %v802_v42 = vmul.f32 %v1257_v37, %v796_v27 }
 0x721   :  { %v824_v38 = vsel %vm822_vm13, %v823_v35, %v821_v36 }
 0x722   :  { %v825_v41 = vmax.f32 %v824_v38, 1e-08  ;;  %v804_v44 = vsel %vm803_vm14, %v796_v27, %v802_v42 }
 0x723   :  { %v807_v46 = vsel %vm805_vm15, %v806_v45, %v804_v44 }
 0x724   :  { %v826_v43 = vmul.f32 %v825_v41, %v817_v40  ;;  %v809_v47 = vmul.f32 %v1253_v28, %v807_v46 }
 0x726   :  { %1258 = vrcp.f32 %v826_v43  ;;  %v835_v49 = vmul.f32 %v1079_v48, %v809_v47 }
 0x728   :  { %v906_v54 = vadd.f32 %v905_v10, %v835_v49 }
 0x733   :  { %v1259_v50 = vpop.eup %1258 }
 0x734   :  { %v828_v53 = vmul.f32 %v1259_v50, %v800_v52 }
 0x736   :  { %v914_v55 = vmul.f32 %v1082_v51, %v828_v53 }
 0x738   :  { %v915_v57 = vadd.f32 %v914_v55, %v906_v54 }
 0x73a   :  { %v923_v58 = vadd.f32 %v1083_v56, %v915_v57 }
 0x73c   :  { %1260 = vtanh.f32 %v923_v58 }
 0x749   :  { %v1261_v60 = vpop.eup %1260 }
 0x74a   :  { %v926_v61 = vmul.f32 %v1261_v60, %v925_v59 }
 0x74c   :  { %1233 = vmatmul.mubr.msk.f32.vlgmr.msra.gmra.mxu1 %vm354_vm8, %v926_v61 }
 0x80c   :  { %v1008_v63 = vpop.f32.mrf.mxu1 }
 0x80d   :  { %v1009_v0 = vadd.f32 %v1084_v62, %v1008_v63 }
 0x80e   :  { %v1234_v1 = vpop.f32.mrf.mxu1 }
 0x80f   :  { %v1013_v3 = vsel %vm1012_vm0, %v1009_v0, -inf }
 0x810   :  { %1014 = vmax.xlane.f32.xlu0 %v1013_v3 }
 0x826   :  { %1025 = vrot.lane.b32.xlu0 %v1524_v39, %s1290_s19 }
 0x899   :  { %v1015_v4 = vpop.xlane.xlu0 %1014 }
 0x89a   :  { %v1016_v5 = vsub.f32 %v1009_v0, %v1015_v4 }
 0x89c   :  { %v1017_v7 = vmul.f32 1.442695, %v1016_v5 }
 0x89d   :  { %v1026_v8 = vpop.permute.xlu0 %1025 }
 0x89e   :  { %1262 = vpow2.f32 %v1017_v7  ;;  %1029 = vst.msk [vmem:[#allocation3] sm:$0xff] %vm1028_vm1, %v1026_v8 }
 0x89f   :  { %1031 = vst.msk [vmem:[#allocation3] sm:$0xff] %vm1030_vm2, %v809_v47 }
 0x8a0   :  { %1033 = vst.msk [vmem:[#allocation3] sm:$0xff] %vm1032_vm3, %v828_v53 }
 0x8ab   :  { %v1263_v9 = vpop.eup %1262 }
 0x8ac   :  { %v1019_v10 = vsel %vm1012_vm0, %v1263_v9, 0.0 }
 0x8ad   :  { %1020 = vadd.xlane.f32.xlu1 %v1019_v10 }
 0x936   :  { %v1021_v11 = vpop.xlane.xlu1 %1020 }
 0x937   :  { %1264 = vrcp.f32 %v1021_v11 }
 0x944   :  { %v1265_v12 = vpop.eup %1264 }
 0x945   :  { %v1023_v13 = vmul.f32 %v1265_v12, %v1263_v9 }
 0x947   :  { %1035 = vrot.lane.b32.xlu1 %v1023_v13, %s1291_s21 }
 0x9b9   :  { %v1036_v39 = vpop.permute.xlu1 %1035 }
 0x9ba   :  { %1039 = vst.msk [vmem:[#allocation3] sm:$0xff] %vm1038_vm4, %v1036_v39 }
 0x9bb   :  { %1041 = vst.msk [vmem:[#allocation3] sm:$0xff] %vm1040_vm5, %v1288_v2 }
 0x9bc   :  { %1277 = shalt.err (!%p1274_p4)
}
 0x9bd   :  { %1051 = dma.vmem_to_hbm [thread:$0]  %s1049_s23, 128, %s1678_s22, [#allocation4]  }
 0x9be   :  { %1286 = dma.done.wait [#allocation4], 128  }
 0x9bf   :  { %1287 = vsyncadd [#allocation4], 4294967168 }
 0x9c0   :  { %1055 = vsyncpa [#allocation4], 1 }

</bundles_post_ra>
